<compile_context>
chip_gen: v7x
topology: tpu7x:2x2x1
jax: 0.10.0
libtpu: 0.0.40
codegen_flags: <defaults>
</compile_context>

<pallas_src>
import jax
import jax.numpy as jnp
from jax.experimental import pallas as pl
from jax.experimental.pallas import tpu as pltpu

HIDDEN = 128  # fixed by the module definition (nn.Linear(state_space, 128))


def _round_up(x, m):
    return (x + m - 1) // m * m


# ----------------------------------------------------------------------------
# forward(x) = relu(x @ W_fc + b_fc)
# ----------------------------------------------------------------------------
def _fc_relu_kernel(x_ref, w_ref, b_ref, o_ref):
    # x_ref: (TB, S)  w_ref: (S, 128)  b_ref: (1, 128)  o_ref: (TB, 128)
    acc = jnp.dot(x_ref[...], w_ref[...], preferred_element_type=jnp.float32)
    acc = acc + b_ref[...]                       # broadcast (1,128) -> (TB,128)
    o_ref[...] = jnp.maximum(acc, 0.0).astype(o_ref.dtype)


def actor_critic_forward(x, w_fc, b_fc, *, compute_dtype=jnp.float32,
                         block_b=512):
    """relu(x @ w_fc + b_fc) — matches ActorCriticNetwork.forward."""
    B, S = x.shape
    assert w_fc.shape == (S, HIDDEN)

    TB = min(_round_up(B, 8), block_b)           # batch tile, multiple of 8
    Bp = _round_up(B, TB)
    if Bp != B:
        x = jnp.pad(x, ((0, Bp - B), (0, 0)))

    xc = x.astype(compute_dtype)
    wc = w_fc.astype(compute_dtype)
    b2d = b_fc.reshape(1, HIDDEN).astype(jnp.float32)
    grid = (pl.cdiv(Bp, TB),)

    itemsize = jnp.dtype(compute_dtype).itemsize
    out = pl.pallas_call(
        _fc_relu_kernel,
        out_shape=jax.ShapeDtypeStruct((Bp, HIDDEN), jnp.float32),
        grid=grid,
        in_specs=[
            pl.BlockSpec((TB, S), lambda i: (i, 0)),        # x: streams per tile
            pl.BlockSpec((S, HIDDEN), lambda i: (0, 0)),    # W: VMEM-resident
            pl.BlockSpec((1, HIDDEN), lambda i: (0, 0)),    # b: VMEM-resident
        ],
        out_specs=pl.BlockSpec((TB, HIDDEN), lambda i: (i, 0)),
        compiler_params=pltpu.CompilerParams(
            dimension_semantics=("parallel",),              # megacore on v7x
        ),
        cost_estimate=pl.CostEstimate(
            flops=2 * Bp * S * HIDDEN,
            transcendentals=0,
            bytes_accessed=(Bp * S + S * HIDDEN) * itemsize
                           + (HIDDEN + Bp * HIDDEN) * 4,
        ),
    )(xc, wc, b2d)
    return out[:B]


# ----------------------------------------------------------------------------
# Fused trunk + actor head + critic head + log-softmax (get_action_and_value
# compute).  The (TB,128) hidden activation stays on-chip (vregs / VMEM) and
# is never written back to HBM; only the tiny logits / value / log-prob
# tensors leave the kernel.
# ----------------------------------------------------------------------------
def _fused_kernel(x_ref, wf_ref, bf_ref, wa_ref, ba_ref, wc_ref, bc_ref,
                  logits_ref, value_ref, logp_ref):
    # trunk: relu(x @ W_fc + b_fc), f32 accumulate
    h = jnp.dot(x_ref[...], wf_ref[...], preferred_element_type=jnp.float32)
    h = jnp.maximum(h + bf_ref[...], 0.0)
    hc = h.astype(wa_ref.dtype)                  # on-chip only, no HBM roundtrip

    # actor head: (TB,128) @ (128,A)
    logits = jnp.dot(hc, wa_ref[...], preferred_element_type=jnp.float32)
    logits = logits + ba_ref[...]
    # critic head: (TB,128) @ (128,1)
    value = jnp.dot(hc, wc_ref[...], preferred_element_type=jnp.float32)
    value = value + bc_ref[...]

    # numerically stable log-softmax over the action axis
    m = jnp.max(logits, axis=-1, keepdims=True)
    z = logits - m
    lse = jnp.log(jnp.sum(jnp.exp(z), axis=-1, keepdims=True))

    logits_ref[...] = logits.astype(logits_ref.dtype)
    value_ref[...] = value.astype(value_ref.dtype)
    logp_ref[...] = (z - lse).astype(logp_ref.dtype)


def actor_critic_fused(x, params, *, compute_dtype=jnp.float32, block_b=512):
    """Returns (logits, value, log_probs) with the hidden kept on-chip."""
    B, S = x.shape
    A = params["w_actor"].shape[1]

    TB = min(_round_up(B, 8), block_b)
    Bp = _round_up(B, TB)
    if Bp != B:
        x = jnp.pad(x, ((0, Bp - B), (0, 0)))

    xc = x.astype(compute_dtype)
    wf = params["w_fc"].astype(compute_dtype)
    bf = params["b_fc"].reshape(1, HIDDEN).astype(jnp.float32)
    wa = params["w_actor"].astype(compute_dtype)
    ba = params["b_actor"].reshape(1, A).astype(jnp.float32)
    wc = params["w_critic"].astype(compute_dtype)
    bc = params["b_critic"].reshape(1, 1).astype(jnp.float32)

    grid = (pl.cdiv(Bp, TB),)
    itemsize = jnp.dtype(compute_dtype).itemsize
    const = lambda i: (0, 0)                      # weights / biases stay resident

    logits, value, logp = pl.pallas_call(
        _fused_kernel,
        out_shape=(
            jax.ShapeDtypeStruct((Bp, A), jnp.float32),
            jax.ShapeDtypeStruct((Bp, 1), jnp.float32),
            jax.ShapeDtypeStruct((Bp, A), jnp.float32),
        ),
        grid=grid,
        in_specs=[
            pl.BlockSpec((TB, S), lambda i: (i, 0)),
            pl.BlockSpec((S, HIDDEN), const),
            pl.BlockSpec((1, HIDDEN), const),
            pl.BlockSpec((HIDDEN, A), const),
            pl.BlockSpec((1, A), const),
            pl.BlockSpec((HIDDEN, 1), const),
            pl.BlockSpec((1, 1), const),
        ],
        out_specs=(
            pl.BlockSpec((TB, A), lambda i: (i, 0)),
            pl.BlockSpec((TB, 1), lambda i: (i, 0)),
            pl.BlockSpec((TB, A), lambda i: (i, 0)),
        ),
        compiler_params=pltpu.CompilerParams(
            dimension_semantics=("parallel",),
        ),
        cost_estimate=pl.CostEstimate(
            flops=2 * Bp * HIDDEN * (S + A + 1),
            transcendentals=Bp * (A + 1),
            bytes_accessed=(Bp * S + S * HIDDEN + HIDDEN * (A + 1)) * itemsize
                           + (HIDDEN + A + 1) * 4
                           + Bp * (2 * A + 1) * 4,
        ),
    )(xc, wf, bf, wa, ba, wc, bc)
    return logits[:B], value[:B], logp[:B]


# ----------------------------------------------------------------------------
# Parameter init mirroring nn.Linear defaults (U[-1/sqrt(fan_in), +]).
# Weights are stored pre-transposed as (in, out).
# ----------------------------------------------------------------------------
def init_params(key, state_space, action_space):
    k1, k2, k3, k4, k5, k6 = jax.random.split(key, 6)
    lim_fc = 1.0 / jnp.sqrt(state_space)
    lim_h = 1.0 / jnp.sqrt(HIDDEN)
    return {
        "w_fc": jax.random.uniform(k1, (state_space, HIDDEN), jnp.float32,
                                   -lim_fc, lim_fc),
        "b_fc": jax.random.uniform(k2, (HIDDEN,), jnp.float32, -lim_fc, lim_fc),
        "w_actor": jax.random.uniform(k3, (HIDDEN, action_space), jnp.float32,
                                      -lim_h, lim_h),
        "b_actor": jax.random.uniform(k4, (action_space,), jnp.float32,
                                      -lim_h, lim_h),
        "w_critic": jax.random.uniform(k5, (HIDDEN, 1), jnp.float32,
                                       -lim_h, lim_h),
        "b_critic": jax.random.uniform(k6, (1,), jnp.float32, -lim_h, lim_h),
    }


if __name__ == "__main__":
    state_space = 16
    action_space = 4
    batch = 8

    key = jax.random.PRNGKey(0)
    k_params, k_x, k_sample = jax.random.split(key, 3)
    params = init_params(k_params, state_space, action_space)
    x = jax.random.normal(k_x, (batch, state_space), jnp.float32)

    # ---- forward (f32 path) ------------------------------------------------
    h = jax.block_until_ready(
        actor_critic_forward(x, params["w_fc"], params["b_fc"]))
    h_ref = jnp.maximum(x @ params["w_fc"] + params["b_fc"], 0.0)
    assert h.shape == (batch, HIDDEN)
    assert jnp.allclose(h, h_ref, atol=1e-5, rtol=1e-5)

    # ---- forward (bf16 compute path, f32 accumulate) -----------------------
    h_bf16 = jax.block_until_ready(
        actor_critic_forward(x, params["w_fc"], params["b_fc"],
                             compute_dtype=jnp.bfloat16))
    assert jnp.allclose(h_bf16, h_ref, atol=5e-2, rtol=5e-2)

    # ---- fused heads + log-softmax (get_action_and_value compute) ----------
    logits, value, logp = actor_critic_fused(x, params)
    logits, value, logp = jax.block_until_ready((logits, value, logp))

    logits_ref = h_ref @ params["w_actor"] + params["b_actor"]
    value_ref = h_ref @ params["w_critic"] + params["b_critic"]
    logp_ref = jax.nn.log_softmax(logits_ref, axis=-1)
    assert logits.shape == (batch, action_space)
    assert value.shape == (batch, 1)
    assert jnp.allclose(logits, logits_ref, atol=1e-5, rtol=1e-5)
    assert jnp.allclose(value, value_ref, atol=1e-5, rtol=1e-5)
    assert jnp.allclose(logp, logp_ref, atol=1e-5, rtol=1e-5)

    # TODO(synk): torch.multinomial(...).item() — sampled outside the kernel.
    action = jax.random.categorical(k_sample, logp, axis=-1)
    jax.block_until_ready(action)

    print("KERNEL_OK")
</pallas_src>

<mosaic_0001>
module attributes {stable_mosaic.version = 11 : i64} {
  func.func @_fc_relu_kernel(%arg0: i32, %arg1: memref<8x16xf32, #tpu.memory_space<vmem>>, %arg2: memref<16x128xf32, #tpu.memory_space<vmem>>, %arg3: memref<1x128xf32, #tpu.memory_space<vmem>>, %arg4: memref<8x128xf32, #tpu.memory_space<vmem>>) attributes {dimension_semantics = [#tpu.dimension_semantics<parallel>], iteration_bounds = array<i64: 1>, scalar_prefetch = 0 : i64, scratch_operands = 0 : i64, tpu.core_type = #tpu.core_type<tc>, window_params = [{transform_indices = @transform_0, window_bounds = array<i64: 8, 16>}, {pipeline_mode = #tpu.pipeline_mode<synchronous>, transform_indices = @transform_1, window_bounds = array<i64: 16, 128>}, {pipeline_mode = #tpu.pipeline_mode<synchronous>, transform_indices = @transform_2, window_bounds = array<i64: 1, 128>}, {transform_indices = @transform_3, window_bounds = array<i64: 8, 128>}]} {
    %c0 = arith.constant 0 : index
    %c0_0 = arith.constant 0 : index
    %0 = vector.load %arg1[%c0, %c0_0] : memref<8x16xf32, #tpu.memory_space<vmem>>, vector<8x16xf32>
    %c0_1 = arith.constant 0 : index
    %c0_2 = arith.constant 0 : index
    %1 = vector.load %arg2[%c0_1, %c0_2] : memref<16x128xf32, #tpu.memory_space<vmem>>, vector<16x128xf32>
    %cst = arith.constant dense<0.000000e+00> : vector<8x128xf32>
    %2 = tpu.matmul %0, %1, %cst {dimension_numbers = #tpu.dot_dimension_numbers<[1], [0], [0], [1], [0, 0, 1, 1], [], []>} : vector<8x16xf32>, vector<16x128xf32>, vector<8x128xf32> -> vector<8x128xf32>
    %c0_3 = arith.constant 0 : index
    %c0_4 = arith.constant 0 : index
    %3 = vector.load %arg3[%c0_3, %c0_4] : memref<1x128xf32, #tpu.memory_space<vmem>>, vector<1x128xf32>
    %4 = vector.broadcast %3 : vector<1x128xf32> to vector<8x128xf32>
    %5 = arith.addf %2, %4 : vector<8x128xf32>
    %cst_5 = arith.constant 0.000000e+00 : f32
    %6 = vector.broadcast %cst_5 : f32 to vector<8x128xf32>
    %7 = arith.maximumf %5, %6 : vector<8x128xf32>
    %c0_6 = arith.constant 0 : index
    %c0_7 = arith.constant 0 : index
    %8 = vector.load %arg4[%c0_6, %c0_7] : memref<8x128xf32, #tpu.memory_space<vmem>>, vector<8x128xf32>
    tpu.vector_store %arg4[%c0_6, %c0_7], %7 {strides = array<i32>} : memref<8x128xf32, #tpu.memory_space<vmem>>, vector<8x128xf32>,
    return
  }
  func.func @transform_0(%arg0: i32) -> (i32, i32) {
    %c0_i32 = arith.constant 0 : i32
    %c0_i32_0 = arith.constant 0 : i32
    return %arg0, %c0_i32 : i32, i32
  }
  func.func @transform_1(%arg0: i32) -> (i32, i32) {
    %c0_i32 = arith.constant 0 : i32
    %c0_i32_0 = arith.constant 0 : i32
    %c0_i32_1 = arith.constant 0 : i32
    return %c0_i32, %c0_i32_0 : i32, i32
  }
  func.func @transform_2(%arg0: i32) -> (i32, i32) {
    %c0_i32 = arith.constant 0 : i32
    %c0_i32_0 = arith.constant 0 : i32
    %c0_i32_1 = arith.constant 0 : i32
    return %c0_i32, %c0_i32_0 : i32, i32
  }
  func.func @transform_3(%arg0: i32) -> (i32, i32) {
    %c0_i32 = arith.constant 0 : i32
    %c0_i32_0 = arith.constant 0 : i32
    return %arg0, %c0_i32 : i32, i32
  }
}

</mosaic_0001>

<bundles_post_ra>
// kernel: tpu_custom_call.1
= control target key start
LH: loop header
LB: loop body
LE: loop exit
PB: predicated region body
PF: predicated region fallthrough
CT: control target
= control target key end

     0   :  { %8 = vsyncpa [#allocation3], 0  ;;  %s312_s0 = inlined_call_operand.hbm [shape: f32[8,16], index: 0, kind: input, shape index: {}]   ;;  %s313_s1 = inlined_call_operand.hbm [shape: f32[16,128], index: 1, kind: input, shape index: {}]   ;;  %s314_s2 = inlined_call_operand.vmem [shape: f32[1,128], index: 2, kind: input, shape index: {}]   ;;  %s315_s3 = inlined_call_operand.hbm [shape: f32[8,128], index: 3, kind: output, shape index: {}]  }
   0x1   :  { %9 = vsyncpa [#allocation6], 0 }
   0x2   :  { %10 = vsyncpa [#allocation4], 0  ;;  %s238_s12 = smov [#allocation2]   ;;  %s239_s14 = smov [#allocation5]  }
   0x3   :  { %s17_s13 = sshll.u32 %s238_s12, 4  ;;  %s26_s15 = sshll.u32 %s239_s14, 4  ;;  %s18_s13 = int_to_ptr.vmem [resolvable:$true] %s17_s13  ;;  %s266_s15 = int_to_ptr.vmem [resolvable:$true] %s26_s15 }
   0x4   :  { %s166_s18 = scalar_lea.hbm %s312_s0, 128 }
   0x5   :  { %p167_p0 = scmp.ne.s32.totalorder %s312_s0, %s166_s18  ;;  %p170_p1 = scmp.lt.u32.totalorder %s166_s18, %s312_s0 }
   0x7   :  { %p172_p2 = pnand %p170_p1, %p167_p0 }
   0x9   :  { %175 = shalt.err (!%p172_p2)
}
   0xa   :  { %s176_s23 = scalar_lea.vmem %s18_s13, 128  ;;  %p181_p4 = scmp.lt.s32.totalorder %s18_s13, %s18_s13 }
   0xb   :  { %p177_p3 = scmp.ne.s32.totalorder %s18_s13, %s176_s23  ;;  %p182_p5 = scmp.lt.s32.totalorder %s176_s23, %s176_s23 }
   0xd   :  { %p183_p6 = por %p182_p5, %p181_p4 }
   0xf   :  { %p184_p7 = pnand %p183_p6, %p177_p3 }
  0x11   :  { %187 = shalt.err (!%p184_p7)
}
  0x12   :  { %20 = dma.hbm_to_vmem [thread:$0]  %s312_s0, 128, %s18_s13, [#allocation3]  }
  0x13   :  { %s188_s28 = scalar_lea.hbm %s313_s1, 256 }
  0x14   :  { %p189_p8 = scmp.ne.s32.totalorder %s313_s1, %s188_s28  ;;  %p192_p9 = scmp.lt.u32.totalorder %s188_s28, %s313_s1 }
  0x16   :  { %p194_p10 = pnand %p192_p9, %p189_p8 }
  0x18   :  { %197 = shalt.err (!%p194_p10)
}
  0x19   :  { %s198_s6 = scalar_lea.vmem %s266_s15, 256  ;;  %p203_p12 = scmp.lt.s32.totalorder %s266_s15, %s266_s15 }
  0x1a   :  { %p199_p11 = scmp.ne.s32.totalorder %s266_s15, %s198_s6  ;;  %p204_p13 = scmp.lt.s32.totalorder %s198_s6, %s198_s6 }
  0x1c   :  { %p205_p0 = por %p204_p13, %p203_p12 }
  0x1e   :  { %p206_p1 = pnand %p205_p0, %p199_p11 }
  0x20   :  { %209 = shalt.err (!%p206_p1)
}
  0x21   :  { %s240_s0 = smov 128   ;;  %s241_s7 = smov 8  }
  0x22   :  { %32 = dma.hbm_to_vmem [thread:$0]  %s313_s1, 256, %s266_s15, [#allocation6], %s240_s0, %s240_s0, %s241_s7  }
  0x23   :  { %232 = dma.done.wait [#allocation3], 128  }
  0x24   :  { %233 = vsyncadd [#allocation3], 4294967168 }
  0x25   :  { %234 = dma.done.wait [#allocation6], 256  }
  0x26   :  { %235 = vsyncadd [#allocation6], 4294967040  ;;  %v242_v0 = vmov 0.0|0.0   ;;  %vm243_vm0 = vmmov 0   ;;  %v244_v1 = vmov 0.0   ;;  %v42_v2 = vld [vmem:[#allocation5] sm:$0xff] }
  0x27   :  { %155 = vmatprep.subr.bf16.mxu0 %v242_v0  ;;  %152 = vmatprep.mubr.msk.f32.mxu0 %vm243_vm0, %v244_v1  ;;  %v43_v3 = vld [vmem:[#allocation5 + $0x8] sm:$0xff]  ;;  %v41_v5 = vld [vmem:[#allocation2] sm:$0xff]  ;;  %vm51_vm1 = vcmask 130048   ;;  %s245_s1 = smov [#allocation7]  }
  0x28   :  { %v156_v4 = vpack.c.bf16 %v43_v3, %v42_v2  ;;  %v143_v6 = vld [vmem:[%s314_s2] ss:$0 sm:$0xff]  ;;  %s133_s12 = sshll.u32 %s245_s1, 4  ;;  %s134_s12 = int_to_ptr.vmem [resolvable:$true] %s133_s12 }
  0x29   :  { %s210_s13 = scalar_lea.vmem %s134_s12, 128  ;;  %p215_p3 = scmp.lt.s32.totalorder %s134_s12, %s134_s12 }
  0x2a   :  { %157 = vmatpush3.bf16.msra.mxu0 %v156_v4  ;;  %p211_p2 = scmp.ne.s32.totalorder %s134_s12, %s210_s13  ;;  %p216_p4 = scmp.lt.s32.totalorder %s210_s13, %s210_s13 }
  0x2c   :  { %p217_p5 = por %p216_p4, %p215_p3 }
  0x2d   :  { %153 = vmatmul.mubr.msk.f32.vlgmr.msra.gmra.mrb[0].mxu0 %vm51_vm1, %v41_v5 }
  0x2e   :  { %p218_p6 = pnand %p217_p5, %p211_p2 }
 0x100   :  { %v121_v7 = vpop.f32.mrb[0].mxu0 }
 0x101   :  { %v122_v8 = vadd.f32 %v143_v6, %v121_v7  ;;  %v154_v9 = vpop.f32.mrb[1].mxu0 }
 0x103   :  { %v125_v10 = vmax.f32 %v122_v8, 0.0 }
 0x105   :  { %126 = vst [vmem:[#allocation7] sm:$0xff] %v125_v10 }
 0x106   :  { %221 = shalt.err (!%p218_p6)
}
 0x107   :  { %s222_s16 = scalar_lea.hbm %s315_s3, 128 }
 0x108   :  { %p223_p7 = scmp.ne.s32.totalorder %s315_s3, %s222_s16  ;;  %p226_p8 = scmp.lt.u32.totalorder %s222_s16, %s315_s3 }
 0x10a   :  { %p228_p9 = pnand %p226_p8, %p223_p7 }
 0x10c   :  { %231 = shalt.err (!%p228_p9)
}
 0x10d   :  { %136 = dma.vmem_to_hbm [thread:$0]  %s134_s12, 128, %s315_s3, [#allocation4]  }
 0x10e   :  { %236 = dma.done.wait [#allocation4], 128  }
 0x10f   :  { %237 = vsyncadd [#allocation4], 4294967168 }
 0x110   :  { %140 = vsyncpa [#allocation3], 1 }
 0x111   :  { %141 = vsyncpa [#allocation6], 1 }
 0x112   :  { %142 = vsyncpa [#allocation4], 1 }

</bundles_post_ra>
